<compile_context>
chip_gen: v7x
topology: tpu7x:2x2x1
jax: 0.10.0
libtpu: 0.0.40
codegen_flags: <defaults>
</compile_context>

<pallas_src>
import jax
import jax.numpy as jnp
from jax.experimental import pallas as pl
from jax.experimental.pallas import tpu as pltpu

LANES = 128            # lane-dense last dim
MAX_TILE_ROWS = 1024   # 1024 x 128 x 4B = 512 KiB per x tile (well under VMEM limits)


def mlp_kernel(x_ref, w1_ref, b1_ref, w2_ref, b2_ref, o_ref):
    """Fused elementwise MLP on a lane-dense tile.

    x_ref:  [tile_rows, LANES]  VMEM tile of flattened inputs
    w1_ref: [3] SMEM   first-layer weights (Linear(1,3).weight flattened)
    b1_ref: [3] SMEM   first-layer bias
    w2_ref: [3] SMEM   second-layer weights (Linear(3,1).weight flattened)
    b2_ref: [1] SMEM   second-layer bias
    o_ref:  [tile_rows, LANES]  output tile
    """
    x = x_ref[...]
    # Unrolled 3 hidden units: pure VPU (mul/add/max), scalars broadcast from SMEM.
    h0 = jnp.maximum(w1_ref[0] * x + b1_ref[0], 0.0)
    h1 = jnp.maximum(w1_ref[1] * x + b1_ref[1], 0.0)
    h2 = jnp.maximum(w1_ref[2] * x + b1_ref[2], 0.0)
    y = w2_ref[0] * h0 + w2_ref[1] * h1 + w2_ref[2] * h2 + b2_ref[0]
    o_ref[...] = y.astype(o_ref.dtype)


def mlp_forward(x, w1, b1, w2, b2):
    """x: [B, 1] float32.  w1: [3, 1], b1: [3], w2: [1, 3], b2: [1] (PyTorch layout)."""
    B = x.shape[0]
    dtype = x.dtype

    # ---- lane-dense reshape: [B,1] -> flat -> padded [rows, LANES] slab ----
    flat = x.reshape(-1)                       # in_features == 1, so this is just [B]
    rows = -(-B // LANES)                      # ceil(B / LANES)
    if rows <= MAX_TILE_ROWS:
        tile_rows = rows                       # single block == full array (no (8,128) constraint)
    else:
        tile_rows = MAX_TILE_ROWS
        rows = -(-rows // tile_rows) * tile_rows   # pad rows to a multiple of tile_rows
    padded = rows * LANES
    x2d = jnp.pad(flat, (0, padded - B)).reshape(rows, LANES)

    # Parameters as small 1-D SMEM arrays (scalar path).
    w1f = w1.reshape(3).astype(dtype)
    b1f = b1.reshape(3).astype(dtype)
    w2f = w2.reshape(3).astype(dtype)
    b2f = b2.reshape(1).astype(dtype)

    grid = (rows // tile_rows,)

    out2d = pl.pallas_call(
        mlp_kernel,
        out_shape=jax.ShapeDtypeStruct((rows, LANES), dtype),
        grid=grid,
        in_specs=[
            pl.BlockSpec((tile_rows, LANES), lambda i: (i, 0)),        # x tile (VMEM, pipelined)
            pl.BlockSpec(memory_space=pltpu.MemorySpace.SMEM),          # w1
            pl.BlockSpec(memory_space=pltpu.MemorySpace.SMEM),          # b1
            pl.BlockSpec(memory_space=pltpu.MemorySpace.SMEM),          # w2
            pl.BlockSpec(memory_space=pltpu.MemorySpace.SMEM),          # b2
        ],
        out_specs=pl.BlockSpec((tile_rows, LANES), lambda i: (i, 0)),
        compiler_params=pltpu.CompilerParams(
            dimension_semantics=("parallel",)),                         # megacore split on v7x
    )(x2d, w1f, b1f, w2f, b2f)

    # ---- undo padding / reshape back to PyTorch layout [B, 1] ----
    return out2d.reshape(-1)[:B].reshape(B, 1)


if __name__ == "__main__":
    key = jax.random.PRNGKey(0)
    kx, kw1, kb1, kw2, kb2 = jax.random.split(key, 5)

    B = 8  # batch of scalar inputs
    x = jax.random.normal(kx, (B, 1), dtype=jnp.float32)

    # Deterministic parameter init (PyTorch Linear shapes: weight [out, in], bias [out]).
    w1 = jax.random.uniform(kw1, (3, 1), dtype=jnp.float32, minval=-1.0, maxval=1.0)
    b1 = jax.random.uniform(kb1, (3,),   dtype=jnp.float32, minval=-1.0, maxval=1.0)
    w2 = jax.random.uniform(kw2, (1, 3), dtype=jnp.float32, minval=-0.5, maxval=0.5)
    b2 = jax.random.uniform(kb2, (1,),   dtype=jnp.float32, minval=-0.5, maxval=0.5)

    out = mlp_forward(x, w1, b1, w2, b2)
    out = jax.block_until_ready(out)

    # Pure-JAX reference check (matches torch: w2(relu(w1(x)))).
    ref = jnp.maximum(x @ w1.T + b1, 0.0) @ w2.T + b2
    assert out.shape == (B, 1)
    assert jnp.allclose(out, ref, atol=1e-5, rtol=1e-5), (out, ref)

    print("KERNEL_OK")
</pallas_src>

<mosaic_0001>
module attributes {stable_mosaic.version = 11 : i64} {
  func.func @mlp_kernel(%arg0: i32, %arg1: memref<1x128xf32, #tpu.memory_space<vmem>>, %arg2: memref<3xf32, #tpu.memory_space<smem>>, %arg3: memref<3xf32, #tpu.memory_space<smem>>, %arg4: memref<3xf32, #tpu.memory_space<smem>>, %arg5: memref<1xf32, #tpu.memory_space<smem>>, %arg6: memref<1x128xf32, #tpu.memory_space<vmem>>) attributes {dimension_semantics = [#tpu.dimension_semantics<parallel>], iteration_bounds = array<i64: 1>, scalar_prefetch = 0 : i64, scratch_operands = 0 : i64, tpu.core_type = #tpu.core_type<tc>, window_params = [{transform_indices = @transform_0, window_bounds = array<i64: 1, 128>}, {transform_indices = @transform_1, window_bounds = array<i64: 3>}, {transform_indices = @transform_2, window_bounds = array<i64: 3>}, {transform_indices = @transform_3, window_bounds = array<i64: 3>}, {transform_indices = @transform_4, window_bounds = array<i64: 1>}, {transform_indices = @transform_5, window_bounds = array<i64: 1, 128>}]} {
    %c0 = arith.constant 0 : index
    %c0_0 = arith.constant 0 : index
    %0 = vector.load %arg1[%c0, %c0_0] : memref<1x128xf32, #tpu.memory_space<vmem>>, vector<1x128xf32>
    %c0_1 = arith.constant 0 : index
    %1 = memref.load %arg2[%c0_1] : memref<3xf32, #tpu.memory_space<smem>>
    %2 = vector.broadcast %1 : f32 to vector<1x128xf32>
    %3 = arith.mulf %2, %0 : vector<1x128xf32>
    %c0_2 = arith.constant 0 : index
    %4 = memref.load %arg3[%c0_2] : memref<3xf32, #tpu.memory_space<smem>>
    %5 = vector.broadcast %4 : f32 to vector<1x128xf32>
    %6 = arith.addf %3, %5 : vector<1x128xf32>
    %cst = arith.constant 0.000000e+00 : f32
    %7 = vector.broadcast %cst : f32 to vector<1x128xf32>
    %8 = arith.maximumf %6, %7 : vector<1x128xf32>
    %c1 = arith.constant 1 : index
    %9 = memref.load %arg2[%c1] : memref<3xf32, #tpu.memory_space<smem>>
    %10 = vector.broadcast %9 : f32 to vector<1x128xf32>
    %11 = arith.mulf %10, %0 : vector<1x128xf32>
    %c1_3 = arith.constant 1 : index
    %12 = memref.load %arg3[%c1_3] : memref<3xf32, #tpu.memory_space<smem>>
    %13 = vector.broadcast %12 : f32 to vector<1x128xf32>
    %14 = arith.addf %11, %13 : vector<1x128xf32>
    %cst_4 = arith.constant 0.000000e+00 : f32
    %15 = vector.broadcast %cst_4 : f32 to vector<1x128xf32>
    %16 = arith.maximumf %14, %15 : vector<1x128xf32>
    %c2 = arith.constant 2 : index
    %17 = memref.load %arg2[%c2] : memref<3xf32, #tpu.memory_space<smem>>
    %18 = vector.broadcast %17 : f32 to vector<1x128xf32>
    %19 = arith.mulf %18, %0 : vector<1x128xf32>
    %c2_5 = arith.constant 2 : index
    %20 = memref.load %arg3[%c2_5] : memref<3xf32, #tpu.memory_space<smem>>
    %21 = vector.broadcast %20 : f32 to vector<1x128xf32>
    %22 = arith.addf %19, %21 : vector<1x128xf32>
    %cst_6 = arith.constant 0.000000e+00 : f32
    %23 = vector.broadcast %cst_6 : f32 to vector<1x128xf32>
    %24 = arith.maximumf %22, %23 : vector<1x128xf32>
    %c0_7 = arith.constant 0 : index
    %25 = memref.load %arg4[%c0_7] : memref<3xf32, #tpu.memory_space<smem>>
    %26 = vector.broadcast %25 : f32 to vector<1x128xf32>
    %27 = arith.mulf %26, %8 : vector<1x128xf32>
    %c1_8 = arith.constant 1 : index
    %28 = memref.load %arg4[%c1_8] : memref<3xf32, #tpu.memory_space<smem>>
    %29 = vector.broadcast %28 : f32 to vector<1x128xf32>
    %30 = arith.mulf %29, %16 : vector<1x128xf32>
    %31 = arith.addf %27, %30 : vector<1x128xf32>
    %c2_9 = arith.constant 2 : index
    %32 = memref.load %arg4[%c2_9] : memref<3xf32, #tpu.memory_space<smem>>
    %33 = vector.broadcast %32 : f32 to vector<1x128xf32>
    %34 = arith.mulf %33, %24 : vector<1x128xf32>
    %35 = arith.addf %31, %34 : vector<1x128xf32>
    %c0_10 = arith.constant 0 : index
    %36 = memref.load %arg5[%c0_10] : memref<1xf32, #tpu.memory_space<smem>>
    %37 = vector.broadcast %36 : f32 to vector<1x128xf32>
    %38 = arith.addf %35, %37 : vector<1x128xf32>
    %c0_11 = arith.constant 0 : index
    %c0_12 = arith.constant 0 : index
    %39 = vector.load %arg6[%c0_11, %c0_12] : memref<1x128xf32, #tpu.memory_space<vmem>>, vector<1x128xf32>
    tpu.vector_store %arg6[%c0_11, %c0_12], %38 {strides = array<i32>} : memref<1x128xf32, #tpu.memory_space<vmem>>, vector<1x128xf32>,
    return
  }
  func.func @transform_0(%arg0: i32) -> (i32, i32) {
    %c0_i32 = arith.constant 0 : i32
    %c0_i32_0 = arith.constant 0 : i32
    return %arg0, %c0_i32 : i32, i32
  }
  func.func @transform_1(%arg0: i32) -> i32 {
    %c0_i32 = arith.constant 0 : i32
    %c0_i32_0 = arith.constant 0 : i32
    return %c0_i32 : i32
  }
  func.func @transform_2(%arg0: i32) -> i32 {
    %c0_i32 = arith.constant 0 : i32
    %c0_i32_0 = arith.constant 0 : i32
    return %c0_i32 : i32
  }
  func.func @transform_3(%arg0: i32) -> i32 {
    %c0_i32 = arith.constant 0 : i32
    %c0_i32_0 = arith.constant 0 : i32
    return %c0_i32 : i32
  }
  func.func @transform_4(%arg0: i32) -> i32 {
    %c0_i32 = arith.constant 0 : i32
    %c0_i32_0 = arith.constant 0 : i32
    return %c0_i32 : i32
  }
  func.func @transform_5(%arg0: i32) -> (i32, i32) {
    %c0_i32 = arith.constant 0 : i32
    %c0_i32_0 = arith.constant 0 : i32
    return %arg0, %c0_i32 : i32, i32
  }
}

</mosaic_0001>

<bundles_post_ra>
// kernel: tpu_custom_call.1
= control target key start
LH: loop header
LB: loop body
LE: loop exit
PB: predicated region body
PF: predicated region fallthrough
CT: control target
= control target key end

     0   :  { %11 = vsyncpa [#allocation5], 0  ;;  %s246_s0 = inlined_call_operand.vmem [shape: f32[1,128], index: 0, kind: input, shape index: {}]   ;;  %s247_s1 = inlined_call_operand.vmem [shape: f32[3], index: 1, kind: input, shape index: {}]   ;;  %s248_s2 = inlined_call_operand.vmem [shape: f32[3], index: 2, kind: input, shape index: {}]   ;;  %s249_s3 = inlined_call_operand.vmem [shape: f32[3], index: 3, kind: input, shape index: {}]   ;;  %s250_s4 = inlined_call_operand.<no memory space> [shape: f32[1], index: 4, kind: input, shape index: {}]   ;;  %s251_s5 = inlined_call_operand.hbm [shape: f32[1,128], index: 5, kind: output, shape index: {}]  }
   0x1   :  { %12 = vsyncpa [#allocation7], 0  ;;  %s32_s20 = sshll.u32 %s248_s2, 4  ;;  %s33_s20 = int_to_ptr.vmem [resolvable:$true] %s32_s20 }
   0x2   :  { %13 = vsyncpa [#allocation4], 0  ;;  %s22_s23 = sshll.u32 %s247_s1, 4  ;;  %s121_s24 = scalar_lea.vmem %s33_s20, 16  ;;  %s23_s23 = int_to_ptr.vmem [resolvable:$true] %s22_s23 }
   0x3   :  { %p122_p0 = scmp.ne.s32.totalorder %s33_s20, %s121_s24  ;;  %p126_p1 = scmp.lt.s32.totalorder %s33_s20, %s33_s20 }
   0x4   :  { %p127_p2 = scmp.lt.s32.totalorder %s121_s24, %s121_s24 }
   0x6   :  { %p128_p3 = por %p127_p2, %p126_p1 }
   0x8   :  { %p129_p4 = pnand %p128_p3, %p122_p0 }
   0xa   :  { %132 = shalt.err (!%p129_p4)
}
   0xb   :  { %s185_s25 = smov [#allocation6]   ;;  %s133_s26 = scalar_lea.vmem %s23_s23, 16 }
   0xc   :  { %35 = dma.vmem_to_smem %s33_s20, 16, %s185_s25, [#allocation7]  }
   0xd   :  { %p134_p5 = scmp.ne.s32.totalorder %s23_s23, %s133_s26  ;;  %p138_p6 = scmp.lt.s32.totalorder %s23_s23, %s23_s23 }
   0xe   :  { %p139_p7 = scmp.lt.s32.totalorder %s133_s26, %s133_s26 }
  0x10   :  { %p140_p8 = por %p139_p7, %p138_p6 }
  0x12   :  { %p141_p9 = pnand %p140_p8, %p134_p5 }
  0x14   :  { %144 = shalt.err (!%p141_p9)
}
  0x15   :  { %s186_s2 = smov [#allocation3]   ;;  %s42_s28 = sshll.u32 %s249_s3, 4  ;;  %s43_s28 = int_to_ptr.vmem [resolvable:$true] %s42_s28 }
  0x16   :  { %25 = dma.vmem_to_smem %s23_s23, 16, %s186_s2, [#allocation5]  }
  0x17   :  { %s145_s29 = scalar_lea.vmem %s43_s28, 16  ;;  %p150_p11 = scmp.lt.s32.totalorder %s43_s28, %s43_s28 }
  0x18   :  { %p146_p10 = scmp.ne.s32.totalorder %s43_s28, %s145_s29  ;;  %p151_p12 = scmp.lt.s32.totalorder %s145_s29, %s145_s29 }
  0x1a   :  { %p152_p13 = por %p151_p12, %p150_p11 }
  0x1c   :  { %p153_p0 = pnand %p152_p13, %p146_p10 }
  0x1e   :  { %156 = shalt.err (!%p153_p0)
}
  0x1f   :  { %s187_s30 = smov [#allocation8]  }
  0x20   :  { %45 = dma.vmem_to_smem %s43_s28, 16, %s187_s30, [#allocation7]  }
  0x21   :  { %179 = dma.done.wait [#allocation5], 16  }
  0x22   :  { %180 = vsyncadd [#allocation5], 4294967280 }
  0x23   :  { %181 = dma.done.wait [#allocation7], 32  }
  0x24   :  { %182 = vsyncadd [#allocation7], 4294967264 }
  0x25   :  { %57 = sfence }
  0x26   :  { %s59_s6 = sld [smem:[#allocation3]]  ;;  %s111_s8 = sld [smem:[#allocation3 + $0x1]]  ;;  %v58_v0 = vld [vmem:[%s246_s0] sm:$0x1]  ;;  %v92_v23 = vstv %s250_s4 }
  0x27   :  { %s62_s7 = sld [smem:[#allocation6]]  ;;  %s112_s9 = sld [smem:[#allocation6 + $0x1]] }
  0x28   :  { %s113_s3 = sld [smem:[#allocation3 + $0x2]]  ;;  %s80_s11 = sld [smem:[#allocation8]] }
  0x29   :  { %s114_s10 = sld [smem:[#allocation6 + $0x2]]  ;;  %s115_s12 = sld [smem:[#allocation8 + $0x1]] }
  0x2a   :  { %s116_s15 = sld [smem:[#allocation8 + $0x2]]  ;;  %s188_s17 = smov [#allocation9]  }
  0x2b   :  { %s101_s18 = sshll.u32 %s188_s17, 4  ;;  %s102_s18 = int_to_ptr.vmem [resolvable:$true] %s101_s18 }
  0x2c   :  { %v60_v1 = vstv %s59_s6  ;;  %v67_v4 = vstv %s111_s8  ;;  %s157_s19 = scalar_lea.vmem %s102_s18, 16  ;;  %s161_s20 = scalar_lea.vmem %s102_s18, 32 }
  0x2d   :  { %v63_v2 = vstv %s62_s7  ;;  %v61_v3 = vmul.f32 %v60_v1, %v58_v0  ;;  %v70_v5 = vstv %s112_s9  ;;  %v68_v6 = vmul.f32 %v67_v4, %v58_v0  ;;  %p158_p1 = scmp.ne.s32.totalorder %s102_s18, %s157_s19  ;;  %p162_p2 = scmp.lt.s32.totalorder %s102_s18, %s102_s18 }
  0x2e   :  { %v74_v7 = vstv %s113_s3  ;;  %v81_v12 = vstv %s80_s11  ;;  %p163_p3 = scmp.lt.s32.totalorder %s161_s20, %s157_s19 }
  0x2f   :  { %v77_v8 = vstv %s114_s10  ;;  %v64_v9 = vadd.f32 %v63_v2, %v61_v3  ;;  %v75_v10 = vmul.f32 %v74_v7, %v58_v0  ;;  %v71_v11 = vadd.f32 %v70_v5, %v68_v6 }
  0x30   :  { %v84_v15 = vstv %s115_s12  ;;  %v88_v17 = vstv %s116_s15  ;;  %p164_p4 = por %p163_p3, %p162_p2 }
  0x31   :  { %v65_v13 = vmax.f32 %v64_v9, 0.0  ;;  %v78_v14 = vadd.f32 %v77_v8, %v75_v10  ;;  %v72_v16 = vmax.f32 %v71_v11, 0.0 }
  0x32   :  { %p165_p5 = pnand %p164_p4, %p158_p1 }
  0x33   :  { %v79_v18 = vmax.f32 %v78_v14, 0.0  ;;  %v82_v19 = vmul.f32 %v81_v12, %v65_v13  ;;  %v85_v20 = vmul.f32 %v84_v15, %v72_v16 }
  0x35   :  { %v89_v21 = vmul.f32 %v88_v17, %v79_v18  ;;  %v86_v22 = vadd.f32 %v85_v20, %v82_v19 }
  0x37   :  { %v90_v24 = vadd.f32 %v89_v21, %v86_v22 }
  0x39   :  { %v93_v25 = vadd.f32 %v92_v23, %v90_v24 }
  0x3b   :  { %94 = vst [vmem:[#allocation9] sm:$0x1] %v93_v25 }
  0x3c   :  { %168 = shalt.err (!%p165_p5)
}
  0x3d   :  { %s169_s23 = scalar_lea.hbm %s251_s5, 16 }
  0x3e   :  { %p170_p6 = scmp.ne.s32.totalorder %s251_s5, %s169_s23  ;;  %p173_p7 = scmp.lt.u32.totalorder %s169_s23, %s251_s5 }
  0x40   :  { %p175_p8 = pnand %p173_p7, %p170_p6 }
  0x42   :  { %178 = shalt.err (!%p175_p8)
}
  0x43   :  { %104 = dma.vmem_to_hbm [thread:$0]  %s102_s18, 16, %s251_s5, [#allocation4]  }
  0x44   :  { %183 = dma.done.wait [#allocation4], 16  }
  0x45   :  { %184 = vsyncadd [#allocation4], 4294967280 }
  0x46   :  { %108 = vsyncpa [#allocation4], 1 }
  0x47   :  { %109 = vsyncpa [#allocation5], 1 }
  0x48   :  { %110 = vsyncpa [#allocation7], 1 }

</bundles_post_ra>
